<compile_context>
chip_gen: v6e
topology: v6e:2x2x1
jax: 0.10.0
libtpu: 0.0.40
codegen_flags: <defaults>
</compile_context>

<pallas_src>
import functools

import jax
import jax.numpy as jnp
from jax.experimental import pallas as pl
from jax.experimental.pallas import tpu as pltpu


def _ce2d_kernel(x_ref, t_ref, loss_ref, cnt_ref, *, hw, ignore_index):
    # x_ref:    (C, TP)  logits tile (native dtype)     [batch/split dims squeezed]
    # t_ref:    (1, TP)  int32 targets tile
    # loss_ref: (1, 1)   f32 per-(batch, split) loss sum   (resident accumulator)
    # cnt_ref:  (1, 1)   i32 per-(batch, split) valid-pixel count
    i = pl.program_id(2)

    @pl.when(i == 0)
    def _():
        loss_ref[...] = jnp.zeros_like(loss_ref)
        cnt_ref[...] = jnp.zeros_like(cnt_ref)

    x = x_ref[...].astype(jnp.float32)                      # (C, TP)
    C, TP = x.shape
    t = t_ref[...]                                          # (1, TP) int32

    # Logical (unclamped) pixel offset of this tile: split-major tile ordering.
    gtile = pl.program_id(1) * pl.num_programs(2) + i
    lane = jax.lax.broadcasted_iota(jnp.int32, (1, TP), 1) + gtile * TP
    valid = (lane < hw) & (t != ignore_index)               # (1, TP) bool

    # Fused log-sum-exp + target pick over the channel (sublane) axis.
    m = jnp.max(x, axis=0, keepdims=True)                   # (1, TP)
    xm = x - m                                              # (C, TP), reused twice
    sumexp = jnp.sum(jnp.exp(xm), axis=0, keepdims=True)    # (1, TP)
    ch = jax.lax.broadcasted_iota(jnp.int32, (C, 1), 0)     # (C, 1), hoisted tiny iota
    picked_m = jnp.sum(jnp.where(ch == t, xm, 0.0), axis=0, keepdims=True)
    nll = jnp.log(sumexp) - picked_m                        # (1, TP)

    # One cross-lane reduce per tile (XLU), accumulated into the resident outputs.
    loss_ref[...] += jnp.sum(jnp.where(valid, nll, 0.0), keepdims=True)
    cnt_ref[...] += jnp.sum(valid.astype(jnp.int32), keepdims=True)


def _vmem_capacity_bytes():
    try:
        return int(pltpu.get_tpu_info().vmem_capacity_bytes)
    except Exception:
        return 64 * 1024 * 1024  # conservative fallback (v7x per-TC VMEM)


def _per_lane_bytes(C, itemsize):
    # Double-buffered streamed bytes per lane (logits column + target) plus
    # ~3 f32 channel-temporaries per lane for upcast / xm / exp intermediates.
    return 2 * (C * itemsize + 4) + 3 * C * 4 + 16


def _pick_tile_p(C, HW, itemsize, vmem_budget_bytes, max_tile=32768):
    """Largest lane tile (multiple of 128) whose working set fits the budget."""
    per_lane = _per_lane_bytes(C, itemsize)
    cap = (vmem_budget_bytes // per_lane) // 128 * 128
    hw_pad = ((HW + 127) // 128) * 128
    return int(max(128, min(cap, max_tile, hw_pad)))


def cross_entropy_loss_2d(inputs, targets, *, ignore_index=-100, tile_p=None):
    """inputs: (N, C, H, W) float, targets: (N, H, W) int -> scalar mean loss."""
    N, C, H, W = inputs.shape
    HW = H * W

    # Free views -- no transpose, no dtype cast (upcast happens in-kernel).
    x = inputs.reshape(N, C, HW)
    t = targets.reshape(N, 1, HW).astype(jnp.int32)

    itemsize = jnp.dtype(x.dtype).itemsize
    vmem_cap = _vmem_capacity_bytes()
    if tile_p is None:
        tile_p = _pick_tile_p(C, HW, itemsize, vmem_budget_bytes=vmem_cap // 3)

    num_tiles = pl.cdiv(HW, tile_p)
    # Extra "parallel" split of the pixel axis so both v7x TensorCores are used
    # even when N == 1 (no effect on v5e/v6e).
    hw_split = 2 if N == 1 else 1
    tiles_per_split = pl.cdiv(num_tiles, hw_split)

    # Explicit VMEM limit, never above 3/4 of physical VMEM (v7x: 64 MiB).
    tile_bytes = _per_lane_bytes(C, itemsize) * tile_p
    vmem_limit = int(min(vmem_cap * 3 // 4,
                         max(16 * 1024 * 1024, tile_bytes + (4 << 20))))

    # Clamp the DMA'd tile index so the fully-out-of-range tiles of an uneven
    # split stay in bounds; the kernel masks them by the *unclamped* lane offset.
    def in_map(n, s, i, tps=tiles_per_split, nt=num_tiles):
        return (n, 0, jnp.minimum(s * tps + i, nt - 1))

    def out_map(n, s, i):
        return (n, s, 0, 0)

    kernel = functools.partial(_ce2d_kernel, hw=HW, ignore_index=ignore_index)

    loss_sum, cnt_sum = pl.pallas_call(
        kernel,
        out_shape=(jax.ShapeDtypeStruct((N, hw_split, 1, 1), jnp.float32),
                   jax.ShapeDtypeStruct((N, hw_split, 1, 1), jnp.int32)),
        grid_spec=pltpu.PrefetchScalarGridSpec(
            num_scalar_prefetch=0,
            grid=(N, hw_split, tiles_per_split),
            in_specs=[
                pl.BlockSpec((None, C, tile_p), in_map),
                pl.BlockSpec((None, 1, tile_p), in_map),
            ],
            out_specs=[
                pl.BlockSpec((None, None, 1, 1), out_map),
                pl.BlockSpec((None, None, 1, 1), out_map),
            ],
        ),
        compiler_params=pltpu.CompilerParams(
            dimension_semantics=("parallel", "parallel", "arbitrary"),
            vmem_limit_bytes=vmem_limit),
    )(x, t)

    total = jnp.sum(loss_sum)
    count = jnp.sum(cnt_sum).astype(jnp.float32)
    # Matches PyTorch NLLLoss(mean): NaN if every pixel is ignore_index.
    return total / count


def _reference(inputs, targets, ignore_index=-100):
    logp = jax.nn.log_softmax(inputs.astype(jnp.float32), axis=1)   # (N,C,H,W)
    safe_t = jnp.clip(targets, 0, inputs.shape[1] - 1)
    picked = jnp.take_along_axis(logp, safe_t[:, None, :, :], axis=1)[:, 0]
    valid = targets != ignore_index
    return -jnp.sum(jnp.where(valid, picked, 0.0)) / jnp.sum(valid)


if __name__ == "__main__":
    key = jax.random.PRNGKey(0)
    k1, k2, k3, k4 = jax.random.split(key, 4)

    # Test 1: basic shape, N=2 (batch-parallel path).
    N, C, H, W = 2, 4, 16, 16
    inputs = jax.random.normal(k1, (N, C, H, W), dtype=jnp.float32)
    targets = jax.random.randint(k2, (N, H, W), 0, C, dtype=jnp.int32)

    loss = jax.block_until_ready(cross_entropy_loss_2d(inputs, targets))
    ref = _reference(inputs, targets)
    assert jnp.allclose(loss, ref, atol=1e-5, rtol=1e-5), (loss, ref)

    # Test 2: N=1 (hw_split path), ragged spatial size, some ignore_index pixels.
    N2, C2, H2, W2 = 1, 5, 10, 10
    inputs2 = jax.random.normal(k3, (N2, C2, H2, W2), dtype=jnp.float32)
    targets2 = jax.random.randint(k4, (N2, H2, W2), 0, C2, dtype=jnp.int32)
    targets2 = targets2.at[0, 0, :3].set(-100)   # a few ignored pixels

    loss2 = jax.block_until_ready(cross_entropy_loss_2d(inputs2, targets2))
    ref2 = _reference(inputs2, targets2)
    assert jnp.allclose(loss2, ref2, atol=1e-5, rtol=1e-5), (loss2, ref2)

    print("KERNEL_OK")
</pallas_src>

<mosaic_0001>
module attributes {stable_mosaic.version = 11 : i64} {
  func.func @_ce2d_kernel(%arg0: i32, %arg1: i32, %arg2: i32, %arg3: memref<1x4x256xf32, #tpu.memory_space<vmem>>, %arg4: memref<1x1x256xi32, #tpu.memory_space<vmem>>, %arg5: memref<1x1x1x1xf32, #tpu.memory_space<vmem>>, %arg6: memref<1x1x1x1xi32, #tpu.memory_space<vmem>>) attributes {dimension_semantics = [#tpu.dimension_semantics<parallel>, #tpu.dimension_semantics<parallel>, #tpu.dimension_semantics<arbitrary>], iteration_bounds = array<i64: 2, 1, 1>, scalar_prefetch = 0 : i64, scratch_operands = 0 : i64, tpu.core_type = #tpu.core_type<tc>, window_params = [{transform_indices = @transform_0, window_bounds = array<i64: 1, 4, 256>}, {transform_indices = @transform_1, window_bounds = array<i64: 1, 1, 256>}, {transform_indices = @transform_2, window_bounds = array<i64: 1, 1, 1, 1>}, {transform_indices = @transform_3, window_bounds = array<i64: 1, 1, 1, 1>}]} {
    %c0_i32 = arith.constant 0 : i32
    %0 = arith.cmpi eq, %arg2, %c0_i32 : i32
    %1 = arith.extui %0 : i1 to i32
    %c0_i32_0 = arith.constant 0 : i32
    %2 = arith.cmpi ne, %1, %c0_i32_0 : i32
    scf.if %2 {
      %cst_29 = arith.constant 0.000000e+00 : f32
      %60 = vector.broadcast %cst_29 : f32 to vector<1x1xf32>
      %c0_30 = arith.constant 0 : index
      %c0_31 = arith.constant 0 : index
      %c0_32 = arith.constant 0 : index
      %c0_33 = arith.constant 0 : index
      %61 = vector.load %arg5[%c0_30, %c0_31, %c0_32, %c0_33] : memref<1x1x1x1xf32, #tpu.memory_space<vmem>>, vector<1x1x1x1xf32>
      %62 = vector.shape_cast %61 : vector<1x1x1x1xf32> to vector<1x1xf32>
      %63 = vector.shape_cast %60 : vector<1x1xf32> to vector<1x1x1x1xf32>
      tpu.vector_store %arg5[%c0_30, %c0_31, %c0_32, %c0_33], %63 {strides = array<i32>} : memref<1x1x1x1xf32, #tpu.memory_space<vmem>>, vector<1x1x1x1xf32>,
      %c0_i32_34 = arith.constant 0 : i32
      %64 = vector.broadcast %c0_i32_34 : i32 to vector<1x1xi32>
      %c0_35 = arith.constant 0 : index
      %c0_36 = arith.constant 0 : index
      %c0_37 = arith.constant 0 : index
      %c0_38 = arith.constant 0 : index
      %65 = vector.load %arg6[%c0_35, %c0_36, %c0_37, %c0_38] : memref<1x1x1x1xi32, #tpu.memory_space<vmem>>, vector<1x1x1x1xi32>
      %66 = vector.shape_cast %65 : vector<1x1x1x1xi32> to vector<1x1xi32>
      %67 = vector.shape_cast %64 : vector<1x1xi32> to vector<1x1x1x1xi32>
      tpu.vector_store %arg6[%c0_35, %c0_36, %c0_37, %c0_38], %67 {strides = array<i32>} : memref<1x1x1x1xi32, #tpu.memory_space<vmem>>, vector<1x1x1x1xi32>,
    } else {
    }
    %c0 = arith.constant 0 : index
    %c0_1 = arith.constant 0 : index
    %c0_2 = arith.constant 0 : index
    %3 = vector.load %arg3[%c0, %c0_1, %c0_2] : memref<1x4x256xf32, #tpu.memory_space<vmem>>, vector<1x4x256xf32>
    %4 = vector.shape_cast %3 : vector<1x4x256xf32> to vector<4x256xf32>
    %c0_3 = arith.constant 0 : index
    %c0_4 = arith.constant 0 : index
    %c0_5 = arith.constant 0 : index
    %5 = vector.load %arg4[%c0_3, %c0_4, %c0_5] : memref<1x1x256xi32, #tpu.memory_space<vmem>>, vector<1x1x256xi32>
    %6 = vector.shape_cast %5 : vector<1x1x256xi32> to vector<1x256xi32>
    %c1_i32 = arith.constant 1 : i32
    %7 = arith.muli %arg1, %c1_i32 : i32
    %8 = arith.addi %7, %arg2 : i32
    %9 = tpu.iota {dimensions = array<i32: 1>} : vector<1x256xi32>
    %c256_i32 = arith.constant 256 : i32
    %10 = arith.muli %8, %c256_i32 : i32
    %11 = vector.broadcast %10 : i32 to vector<1x256xi32>
    %12 = arith.addi %9, %11 : vector<1x256xi32>
    %c256_i32_6 = arith.constant 256 : i32
    %13 = vector.broadcast %c256_i32_6 : i32 to vector<1x256xi32>
    %14 = arith.cmpi slt, %12, %13 : vector<1x256xi32>
    %c-100_i32 = arith.constant -100 : i32
    %15 = vector.broadcast %c-100_i32 : i32 to vector<1x256xi32>
    %16 = arith.cmpi ne, %6, %15 : vector<1x256xi32>
    %17 = arith.andi %14, %16 : vector<1x256xi1>
    %cst = arith.constant dense<0xFF800000> : vector<256xf32>
    %18 = vector.multi_reduction <maximumf>, %4, %cst [0] : vector<4x256xf32> to vector<256xf32>
    %19 = vector.shape_cast %18 : vector<256xf32> to vector<1x256xf32>
    %20 = vector.broadcast %19 : vector<1x256xf32> to vector<4x256xf32>
    %21 = arith.subf %4, %20 : vector<4x256xf32>
    %22 = math.exp %21 : vector<4x256xf32>
    %cst_7 = arith.constant dense<0.000000e+00> : vector<256xf32>
    %23 = vector.multi_reduction <add>, %22, %cst_7 [0] : vector<4x256xf32> to vector<256xf32>
    %24 = vector.shape_cast %23 : vector<256xf32> to vector<1x256xf32>
    %25 = tpu.iota {dimensions = array<i32: 0>} : vector<4x1xi32>
    %26 = vector.broadcast %25 : vector<4x1xi32> to vector<4x256xi32>
    %27 = vector.broadcast %6 : vector<1x256xi32> to vector<4x256xi32>
    %28 = arith.cmpi eq, %26, %27 : vector<4x256xi32>
    %cst_8 = arith.constant 0.000000e+00 : f32
    %29 = vector.broadcast %cst_8 : f32 to vector<4x256xf32>
    %30 = arith.select %28, %21, %29 : vector<4x256xi1>, vector<4x256xf32>
    %cst_9 = arith.constant dense<0.000000e+00> : vector<256xf32>
    %31 = vector.multi_reduction <add>, %30, %cst_9 [0] : vector<4x256xf32> to vector<256xf32>
    %32 = vector.shape_cast %31 : vector<256xf32> to vector<1x256xf32>
    %33 = math.log %24 : vector<1x256xf32>
    %34 = arith.subf %33, %32 : vector<1x256xf32>
    %c0_10 = arith.constant 0 : index
    %c0_11 = arith.constant 0 : index
    %c0_12 = arith.constant 0 : index
    %c0_13 = arith.constant 0 : index
    %35 = vector.load %arg5[%c0_10, %c0_11, %c0_12, %c0_13] : memref<1x1x1x1xf32, #tpu.memory_space<vmem>>, vector<1x1x1x1xf32>
    %36 = vector.shape_cast %35 : vector<1x1x1x1xf32> to vector<1x1xf32>
    %cst_14 = arith.constant 0.000000e+00 : f32
    %37 = vector.broadcast %cst_14 : f32 to vector<1x256xf32>
    %38 = arith.select %17, %34, %37 : vector<1x256xi1>, vector<1x256xf32>
    %39 = vector.shape_cast %38 : vector<1x256xf32> to vector<1x1x256xf32>
    %cst_15 = arith.constant dense<0.000000e+00> : vector<1xf32>
    %40 = vector.multi_reduction <add>, %39, %cst_15 [1, 2] : vector<1x1x256xf32> to vector<1xf32>
    %41 = vector.shape_cast %40 : vector<1xf32> to vector<1x1x1xf32>
    %42 = vector.extract %41[0, 0, 0] : f32 from vector<1x1x1xf32>
    %43 = vector.broadcast %42 : f32 to vector<1x1xf32>
    %44 = arith.addf %36, %43 : vector<1x1xf32>
    %c0_16 = arith.constant 0 : index
    %c0_17 = arith.constant 0 : index
    %c0_18 = arith.constant 0 : index
    %c0_19 = arith.constant 0 : index
    %45 = vector.load %arg5[%c0_16, %c0_17, %c0_18, %c0_19] : memref<1x1x1x1xf32, #tpu.memory_space<vmem>>, vector<1x1x1x1xf32>
    %46 = vector.shape_cast %45 : vector<1x1x1x1xf32> to vector<1x1xf32>
    %47 = vector.shape_cast %44 : vector<1x1xf32> to vector<1x1x1x1xf32>
    tpu.vector_store %arg5[%c0_16, %c0_17, %c0_18, %c0_19], %47 {strides = array<i32>} : memref<1x1x1x1xf32, #tpu.memory_space<vmem>>, vector<1x1x1x1xf32>,
    %c0_20 = arith.constant 0 : index
    %c0_21 = arith.constant 0 : index
    %c0_22 = arith.constant 0 : index
    %c0_23 = arith.constant 0 : index
    %48 = vector.load %arg6[%c0_20, %c0_21, %c0_22, %c0_23] : memref<1x1x1x1xi32, #tpu.memory_space<vmem>>, vector<1x1x1x1xi32>
    %49 = vector.shape_cast %48 : vector<1x1x1x1xi32> to vector<1x1xi32>
    %50 = arith.extui %17 : vector<1x256xi1> to vector<1x256xi32>
    %51 = vector.shape_cast %50 : vector<1x256xi32> to vector<1x1x256xi32>
    %cst_24 = arith.constant dense<0> : vector<1xi32>
    %52 = vector.multi_reduction <add>, %51, %cst_24 [1, 2] : vector<1x1x256xi32> to vector<1xi32>
    %53 = vector.shape_cast %52 : vector<1xi32> to vector<1x1x1xi32>
    %54 = vector.extract %53[0, 0, 0] : i32 from vector<1x1x1xi32>
    %55 = vector.broadcast %54 : i32 to vector<1x1xi32>
    %56 = arith.addi %49, %55 : vector<1x1xi32>
    %c0_25 = arith.constant 0 : index
    %c0_26 = arith.constant 0 : index
    %c0_27 = arith.constant 0 : index
    %c0_28 = arith.constant 0 : index
    %57 = vector.load %arg6[%c0_25, %c0_26, %c0_27, %c0_28] : memref<1x1x1x1xi32, #tpu.memory_space<vmem>>, vector<1x1x1x1xi32>
    %58 = vector.shape_cast %57 : vector<1x1x1x1xi32> to vector<1x1xi32>
    %59 = vector.shape_cast %56 : vector<1x1xi32> to vector<1x1x1x1xi32>
    tpu.vector_store %arg6[%c0_25, %c0_26, %c0_27, %c0_28], %59 {strides = array<i32>} : memref<1x1x1x1xi32, #tpu.memory_space<vmem>>, vector<1x1x1x1xi32>,
    return
  }
  func.func @transform_0(%arg0: i32, %arg1: i32, %arg2: i32) -> (i32, i32, i32) {
    %c1_i32 = arith.constant 1 : i32
    %0 = arith.muli %arg1, %c1_i32 : i32
    %1 = arith.addi %0, %arg2 : i32
    %c0_i32 = arith.constant 0 : i32
    %2 = arith.minsi %1, %c0_i32 : i32
    %c0_i32_0 = arith.constant 0 : i32
    %c0_i32_1 = arith.constant 0 : i32
    return %arg0, %c0_i32_0, %2 : i32, i32, i32
  }
  func.func @transform_1(%arg0: i32, %arg1: i32, %arg2: i32) -> (i32, i32, i32) {
    %c1_i32 = arith.constant 1 : i32
    %0 = arith.muli %arg1, %c1_i32 : i32
    %1 = arith.addi %0, %arg2 : i32
    %c0_i32 = arith.constant 0 : i32
    %2 = arith.minsi %1, %c0_i32 : i32
    %c0_i32_0 = arith.constant 0 : i32
    %c0_i32_1 = arith.constant 0 : i32
    return %arg0, %c0_i32_0, %2 : i32, i32, i32
  }
  func.func @transform_2(%arg0: i32, %arg1: i32, %arg2: i32) -> (i32, i32, i32, i32) {
    %c0_i32 = arith.constant 0 : i32
    %c0_i32_0 = arith.constant 0 : i32
    %c0_i32_1 = arith.constant 0 : i32
    return %arg0, %arg1, %c0_i32, %c0_i32_0 : i32, i32, i32, i32
  }
  func.func @transform_3(%arg0: i32, %arg1: i32, %arg2: i32) -> (i32, i32, i32, i32) {
    %c0_i32 = arith.constant 0 : i32
    %c0_i32_0 = arith.constant 0 : i32
    %c0_i32_1 = arith.constant 0 : i32
    return %arg0, %arg1, %c0_i32, %c0_i32_0 : i32, i32, i32, i32
  }
}

</mosaic_0001>

<bundles_post_ra>
// kernel: tpu_custom_call.1
= control target key start
LH: loop header
LB: loop body
LE: loop exit
PB: predicated region body
PF: predicated region fallthrough
CT: control target
= control target key end

     0   :  { %9 = vsyncpa [#allocation3], 0  ;;  %s1004_s0 = inlined_call_operand.hbm [shape: f32[2,4,256], index: 0, kind: input, shape index: {}]   ;;  %s1005_s1 = inlined_call_operand.hbm [shape: s32[2,1,256], index: 1, kind: input, shape index: {}]   ;;  %s1006_s2 = inlined_call_operand.vmem [shape: f32[2,1,1,1], index: 2, kind: output, shape index: {0}]   ;;  %s1007_s3 = inlined_call_operand.vmem [shape: s32[2,1,1,1], index: 3, kind: output, shape index: {1}]  }
   0x1   :  { %11 = vsyncpa [#allocation3 + $0x1], 0 }
   0x2   :  { %12 = vsyncpa [#allocation5], 0 }
   0x3   :  { %14 = vsyncpa [#allocation5 + $0x1], 0  ;;  %s831_s12 = smov 0   ;;  %s833_s13 = smov 0  }
   0x4   :  { %s835_s14 = smov 0   ;;  %s837_s15 = smov 0  }
   0x5   :  { %s839_s16 = smov 0   ;;  %s841_s17 = smov 0  }
   0x6 LB: > { %s605_s18 = sadd.s32 4294967295, %s805_s17   ;;  %s39_s19 = sadd.s32 1, %s801_s16  ;;  %s805_s17 = sphi %s841_s17, %s20_s17   ;;  %s801_s16 = sphi %s839_s16, %s1016_s16   ;;  %s797_s15 = sphi %s837_s15, %s1015_s15   ;;  %s793_s14 = sphi %s835_s14, %s1014_s14   ;;  %s789_s13 = sphi %s833_s13, %s1013_s13   ;;  %s785_s12 = sphi %s831_s12, %s1012_s12  }
   0x7   : > { %p41_p0 = scmp.ge.s32.totalorder %s39_s19, 2  ;;  %s54_s20 = sadd.s32 1, %s793_s14 }
   0x8   : > { %p61_p1 = scmp.ne.s32.totalorder %s793_s14, %s789_s13  ;;  %p62_p2 = scmp.eq.s32.totalorder %s805_s17, 0 }
   0x9   : > { %s1018_s19 = smov (%p41_p0, %s39_s19), 0  ;;  %p67_p4 = scmp.ne.s32.totalorder %s789_s13, %s785_s12 }
   0xa   : > { %p867_p3 = por %p62_p2, %p61_p1  ;;  %s49_s22 = ssub.s32 %s801_s16, %s1018_s19 }
   0xb   : > { %p68_p5 = scmp.eq.s32.totalorder %s605_s18, 0  ;;  %p52_p6 = scmp.eq.s32.totalorder %s49_s22, 0 }
   0xc   : > { %p637_p8 = scmp.lt.s32.totalorder %s805_s17, 2  ;;  %s883_s25 = sand.u32 1, %s793_s14  }
   0xd   : > { %p874_p7 = por %p68_p5, %p67_p4  ;;  %s620_s26 = sshll.u32 %s801_s16, 7 }
   0xe   : > { %s880_s24 = scalar_select %p52_p6, %s793_s14, %s54_s20  }
   0xf   : > { %s609_s27 = sshll.u32 %s883_s25, 3  ;;  %s196_s30 = scalar_lea.hbm %s1004_s0, %s620_s26 }
  0x10   : > { %s185_s4 = scalar_lea.vmem [#allocation2], %s609_s27  ;;  %p892_p9 = pnand %p637_p8, %p867_p3 }
  0x11   : > { %s198_s5 = sshll.u32 %s185_s4, 4  ;;  %p615_p10 = scmp.ge.s32.totalorder %s805_s17, 1  ;;  %s199_s5 = int_to_ptr.vmem [resolvable:$true] %s198_s5 }
  0x12   : > { %p227_p11 = scmp.lt.s32.totalorder %s805_s17, 3  ;;  %s182_s7 = scalar_lea.sflag [#allocation3], %s883_s25 }
  0x13   : > { %p697_p12 = pneg %p892_p9  ;;  %s708_s8 = scalar_lea.vmem %s199_s5, 128 }
  0x14   : > { %p709_p13 = scmp.ne.s32.totalorder %s199_s5, %s708_s8  ;;  %s807_s9 = smov [#allocation2]  }
  0x15   : > { %s713_s10 = sshll.u32 %s807_s9, 4  ;;  %s714_s10 = int_to_ptr.vmem [resolvable:$false] %s713_s10 }
  0x16   : > { %p711_p0 = pnand %p709_p13, %p697_p12  ;;  %s715_s11 = scalar_lea.vmem %s714_s10, 256 }
  0x17   : > { %p716_p2 = scmp.lt.s32.totalorder %s199_s5, %s714_s10  ;;  %p717_p3 = scmp.lt.s32.totalorder %s715_s11, %s708_s8 }
  0x18   : > { %p712_p1 = pneg %p711_p0 }
  0x19   : > { %p718_p4 = por %p717_p3, %p716_p2 }
  0x1b   : > { %p719_p5 = pnand %p718_p4, %p712_p1 }
  0x1d   : > { %722 = shalt.err (!%p719_p5)
}
  0x1e   : > { %633 = dma.hbm_to_vmem [thread:$0]  (!%p892_p9), %s196_s30, 128, %s199_s5, %s182_s7  }
  0x1f   : > { %p910_p6 = pnand %p615_p10, %p227_p11  ;;  %s612_s18 = sshll.u32 %s883_s25, 1 }
  0x20   : > { %s621_s20 = sshll.u32 %s801_s16, 5  ;;  %s209_s27 = scalar_lea.vmem [#allocation4], %s612_s18 }
  0x21   : > { %s220_s26 = scalar_lea.hbm %s1005_s1, %s621_s20  ;;  %s222_s28 = sshll.u32 %s209_s27, 4  ;;  %s223_s28 = int_to_ptr.vmem [resolvable:$true] %s222_s28 }
  0x22   : > { %s206_s29 = scalar_lea.sflag [#allocation5], %s883_s25  ;;  %s736_s4 = scalar_lea.vmem %s223_s28, 32 }
  0x23   : > { %p737_p8 = scmp.ne.s32.totalorder %s223_s28, %s736_s4  ;;  %s808_s30 = smov [#allocation4]  }
  0x24   : > { %s741_s5 = sshll.u32 %s808_s30, 4  ;;  %s742_s5 = int_to_ptr.vmem [resolvable:$false] %s741_s5 }
  0x25   : > { %p739_p13 = pnand %p737_p8, %p697_p12  ;;  %s743_s7 = scalar_lea.vmem %s742_s5, 64 }
  0x26   : > { %p744_p10 = scmp.lt.s32.totalorder %s223_s28, %s742_s5  ;;  %p745_p11 = scmp.lt.s32.totalorder %s743_s7, %s736_s4 }
  0x27   : > { %p740_p0 = pneg %p739_p13 }
  0x28   : > { %p746_p1 = por %p745_p11, %p744_p10 }
  0x2a   : > { %p747_p2 = pnand %p746_p1, %p740_p0 }
  0x2c   : > { %750 = shalt.err (!%p747_p2)
}
  0x2d   : > { %636 = dma.hbm_to_vmem [thread:$0]  (!%p892_p9), %s220_s26, 32, %s223_s28, %s206_s29  }
  0x2e   : > { %231 = sbr.rel (%p910_p6) target bundleno = 333 (0x14d), region = 28  ;;  %s233_s25 = sand.u32 (!%p910_p6), 1, %s789_s13  }
  0x2f   : > { %s616_s8 = sshll.u32 (!%p910_p6), %s233_s25, 3  ;;  %s234_s9 = scalar_lea.sflag (!%p910_p6), [#allocation3], %s233_s25 }
  0x30   : > { %s237_s10 = scalar_lea.vmem (!%p910_p6), [#allocation2], %s616_s8 }
  0x33   : > { %776 = dma.done.wait (%p874_p7), %s234_s9, 128  }
  0x34   : > { %778 = vsyncadd (%p874_p7), %s234_s9, 4294967168  ;;  %s617_s11 = sshll.u32 %s233_s25, 1  ;;  %s243_s18 = scalar_lea.sflag [#allocation5], %s233_s25 }
  0x35   : > { %s246_s20 = scalar_lea.vmem [#allocation4], %s617_s11 }
  0x36   : > { %780 = dma.done.wait (%p874_p7), %s243_s18, 32  }
  0x37   : > { %782 = vsyncadd (%p874_p7), %s243_s18, 4294967264  ;;  %v322_v0 = vlaneseq  ;;  %vm337_vm0 = vcmask 1043456   ;;  %v309_v4 = vld [vmem:[%s246_s20] sm:$0x3]  ;;  %v308_v5 = vld [vmem:[%s237_s10] sm:$0xff]  ;;  %v809_v7 = vmov 0  }
  0x38   : > { %vm320_vm1 = vcmp.ne.s32.totalorder %v309_v4, 4294967196  ;;  %v335_v6 = vcombine.high %v308_v5, %v308_v5  ;;  %v338_v9 = vsel %vm337_vm0, %v308_v5, -inf  ;;  %vm416_vm2 = vcmask 1040384   ;;  %p289_p7 = scmp.lt.s32.totalorder %s797_s15, 1 }
  0x39   : > { %v323_v1 = vshrl.u32 %v322_v0, 7  ;;  %v321_v8 = vsel %vm320_vm1, 1, %v809_v7  ;;  %v339_v12 = vrot.slane %v338_v9, 4  ;;  %vm305_vm7 = vcmask 0  }
  0x3a   : > { %v345_v13 = vsel %vm337_vm0, %v335_v6, -inf  ;;  %s1020_s15 = smov (!%p289_p7, %s797_s15), 1 }
  0x3b   : > { %v324_v2 = vsub.s32 0, %v323_v1  ;;  %v328_v3 = vsub.s32 1, %v323_v1  ;;  %v346_v14 = vrot.slane %v345_v13, 4  ;;  %v340_v17 = vmax.f32 %v338_v9, %v339_v12  ;;  %s968_s12 = scalar_lea.vmem %s1006_s2, %s1020_s15  ;;  %s975_s26 = scalar_lea.vmem %s1007_s3, %s1020_s15 }
  0x3c   : > { %307 = vst.msk [vmem:[%s975_s26] sm:$0x1] %vm305_vm7, %v809_v7 }
  0x3d   : > { %v938_v10 = vrot.slane %v321_v8, %v324_v2  ;;  %v940_v11 = vrot.slane %v321_v8, %v328_v3  ;;  %v347_v20 = vmax.f32 %v345_v13, %v346_v14  ;;  %v341_v22 = vrot.slane %v340_v17, 2 }
  0x3e   : > { %v381_v37 = vrot.slane %v309_v4, %v324_v2  ;;  %v385_v38 = vrot.slane %v309_v4, %v328_v3 }
  0x3f   : > { %vm330_vm3 = vcmp.ne.s32.totalorder %v938_v10, 0  ;;  %vm331_vm4 = vcmp.ne.s32.totalorder %v940_v11, 0  ;;  %v348_v23 = vrot.slane %v347_v20, 2  ;;  %v342_v26 = vmax.f32 %v340_v17, %v341_v22 }
  0x40   : > { %v434_v15 = vsel %vm330_vm3, 1, %v809_v7  ;;  %v435_v16 = vsel %vm331_vm4, 1, %v809_v7  ;;  %vm386_vm5 = vcmp.eq.s32.totalorder %v323_v1, %v381_v37  ;;  %vm387_vm6 = vcmp.eq.s32.totalorder %v323_v1, %v385_v38 }
  0x41   : > { %v436_v18 = vsel %vm416_vm2, %v434_v15, 0  ;;  %v437_v19 = vsel %vm416_vm2, %v435_v16, 0  ;;  %v349_v27 = vmax.f32 %v347_v20, %v348_v23  ;;  %v343_v29 = vrot.slane %v342_v26, 1 }
  0x42   : > { %v438_v21 = vadd.s32 %v437_v19, %v436_v18  ;;  %v810_v10 = vmov 0.0  }
  0x43   : > { %v350_v30 = vrot.slane %v349_v27, 1  ;;  %v344_v32 = vmax.f32 %v342_v26, %v343_v29  ;;  %306 = vst.msk [vmem:[%s968_s12] sm:$0x1] %vm305_vm7, %v810_v10 }
  0x44   : > { %v440_v24 = vshrl.u32 %v438_v21, 16  ;;  %v439_v25 = vand.u32 65535, %v438_v21 }
  0x45   : > { %v351_v33 = vmax.f32 %v349_v27, %v350_v30 }
  0x46   : > { %v442_v28 = vcvt.s32.f32 %v440_v24  ;;  %v441_v31 = vcvt.s32.f32 %v439_v25 }
  0x47   : > { %v354_v34 = vcombine.low %v344_v32, %v351_v33 }
  0x48   : > { %445 = vadd.xlane.f32.xlu0 %v442_v28 }
  0x49   : > { %v356_v35 = vsub.f32 %v308_v5, %v354_v34 }
  0x4b   : > { %v357_v36 = vmul.f32 1.442695, %v356_v35  ;;  %v389_v39 = vcombine.high %v356_v35, %v356_v35  ;;  %v391_v41 = vsel %vm386_vm5, %v356_v35, 0.0 }
  0x4c   : > { %443 = vadd.xlane.f32.xlu0 %v441_v31  ;;  %v393_v47 = vsel %vm337_vm0, %v391_v41, 0.0 }
  0x4d   : > { %689 = vpow2.f32 %v357_v36  ;;  %v392_v45 = vsel %vm387_vm6, %v389_v39, 0.0  ;;  %v394_v53 = vrot.slane %v393_v47, 4  ;;  %v413_v39 = vld [vmem:[%s968_s12] sm:$0x1] }
  0x4e   : > { %v400_v50 = vsel %vm337_vm0, %v392_v45, 0.0 }
  0x4f   : > { %v401_v56 = vrot.slane %v400_v50, 4  ;;  %v395_v59 = vadd.f32 %v394_v53, %v393_v47 }
  0x51   : > { %v402_v62 = vadd.f32 %v401_v56, %v400_v50  ;;  %v396_v0 = vrot.slane %v395_v59, 2 }
  0x53   : > { %v403_v1 = vrot.slane %v402_v62, 2  ;;  %v397_v2 = vadd.f32 %v396_v0, %v395_v59 }
  0x55   : > { %v404_v3 = vadd.f32 %v403_v1, %v402_v62  ;;  %v398_v4 = vrot.slane %v397_v2, 1 }
  0x57   : > { %v405_v5 = vrot.slane %v404_v3, 1  ;;  %v399_v6 = vadd.f32 %v398_v4, %v397_v2 }
  0x59   : > { %v406_v9 = vadd.f32 %v405_v5, %v404_v3 }
  0x5a   : > { %v690_v40 = vpop.eup %689 }
  0x5b   : > { %v360_v42 = vcombine.high %v690_v40, %v690_v40  ;;  %v362_v43 = vsel %vm337_vm0, %v690_v40, 0.0  ;;  %v433_v40 = vld [vmem:[%s975_s26] sm:$0x1] }
  0x5c   : > { %v363_v44 = vrot.slane %v362_v43, 4 }
  0x5d   : > { %v369_v46 = vsel %vm337_vm0, %v360_v42, 0.0 }
  0x5e   : > { %v364_v48 = vadd.f32 %v363_v44, %v362_v43  ;;  %v370_v49 = vrot.slane %v369_v46, 4 }
  0x60   : > { %v365_v51 = vrot.slane %v364_v48, 2  ;;  %v371_v52 = vadd.f32 %v370_v49, %v369_v46 }
  0x62   : > { %v366_v54 = vadd.f32 %v365_v51, %v364_v48  ;;  %v372_v55 = vrot.slane %v371_v52, 2 }
  0x64   : > { %v367_v57 = vrot.slane %v366_v54, 1  ;;  %v373_v58 = vadd.f32 %v372_v55, %v371_v52 }
  0x66   : > { %v368_v60 = vadd.f32 %v367_v57, %v366_v54  ;;  %v374_v61 = vrot.slane %v373_v58, 1 }
  0x68   : > { %v375_v63 = vadd.f32 %v374_v61, %v373_v58  ;;  %691 = vlog2.f32 %v368_v60 }
  0x6a   : > { %693 = vlog2.f32 %v375_v63 }
  0x75   : > { %v692_v8 = vpop.eup %691 }
  0x76   : > { %v408_v12 = vmul.f32 0.6931472, %v692_v8 }
  0x77   : > { %v694_v13 = vpop.eup %693 }
  0x78   : > { %v410_v14 = vmul.f32 0.6931472, %v694_v13  ;;  %v411_v15 = vsub.f32 %v408_v12, %v399_v6 }
  0x7a   : > { %v412_v16 = vsub.f32 %v410_v14, %v406_v9  ;;  %v414_v17 = vsel %vm330_vm3, %v411_v15, 0.0 }
  0x7b   : > { %v417_v18 = vsel %vm416_vm2, %v414_v17, 0.0 }
  0x7c   : > { %v415_v19 = vsel %vm331_vm4, %v412_v16, 0.0 }
  0x7d   : > { %v418_v20 = vsel %vm416_vm2, %v415_v19, 0.0 }
  0x7e   : > { %v419_v21 = vadd.f32 %v418_v20, %v417_v18 }
  0x80   : > { %420 = vadd.xlane.f32.xlu1 %v419_v21 }
  0xd1   : > { %v446_v11 = vpop.xlane.xlu0 %445 }
  0xd2   : > { %v448_v22 = vcvt.f32.s32 %v446_v11 }
  0xd4   : > { %v449_v24 = vshll.u32 %v448_v22, 16 }
  0xd5   : > { %v444_v23 = vpop.xlane.xlu0 %443 }
  0xd6   : > { %v447_v25 = vcvt.f32.s32 %v444_v23 }
  0xd8   : > { %v450_v26 = vadd.s32 %v449_v24, %v447_v25 }
  0xda   : > { %v451_v27 = vrot.slane %v450_v26, 4 }
  0xdc   : > { %v452_v28 = vadd.s32 %v451_v27, %v450_v26 }
  0xde   : > { %v453_v30 = vrot.slane %v452_v28, 2 }
  0xe0   : > { %v454_v33 = vadd.s32 %v453_v30, %v452_v28 }
  0xe2   : > { %v455_v7 = vrot.slane %v454_v33, 1 }
  0xe4   : > { %v456_v38 = vadd.s32 %v455_v7, %v454_v33 }
 0x109   : > { %v421_v29 = vpop.xlane.xlu1 %420 }
 0x10a   : > { %v422_v31 = vrot.slane %v421_v29, 4 }
 0x10c   : > { %v423_v32 = vadd.f32 %v422_v31, %v421_v29 }
 0x10e   : > { %v424_v34 = vrot.slane %v423_v32, 2 }
 0x110   : > { %v425_v35 = vadd.f32 %v424_v34, %v423_v32 }
 0x112   : > { %v426_v36 = vrot.slane %v425_v35, 1 }
 0x114   : > { %v427_v37 = vadd.f32 %v426_v36, %v425_v35 }
 0x116   : > { %622 = vpush %v427_v37 }
 0x117   : > { %624 = vpush %v456_v38 }
 0x147   : > { %s623_s15 = spop %622 }
 0x148   : > { %v429_v41 = vstv %s623_s15  ;;  %s625_s27 = spop %624 }
 0x149   : > { %v430_v42 = vadd.f32 %v429_v41, %v413_v39  ;;  %v458_v43 = vstv %s625_s27 }
 0x14a   : > { %v459_v44 = vadd.s32 %v458_v43, %v433_v40 }
 0x14b   : > { %432 = vst.msk [vmem:[%s968_s12] sm:$0x1] %vm305_vm7, %v430_v42 }
 0x14c   : > { %460 = vst.msk [vmem:[%s975_s26] sm:$0x1] %vm305_vm7, %v459_v44 }
 0x14d PF: > { %s20_s17 = sadd.s32 1, %s805_s17   ;;  %s1012_s12 = smov %s789_s13 }
 0x14e   : > { %p17_p9 = scmp.ge.s32.totalorder %s20_s17, 4   ;;  %s1013_s13 = smov %s793_s14 }
 0x14f   : > { %s1014_s14 = smov %s880_s24  ;;  %s1015_s15 = smov %s801_s16 }
 0x150   : > { %s1016_s16 = smov %s1018_s19  ;;  %19 = sbr.rel (!%p17_p9) target bundleno = 6 (0x6), region = 97 }
 0x155   :  { %502 = vsyncpa [#allocation3], 1 }
 0x156   :  { %504 = vsyncpa [#allocation3 + $0x1], 1 }
 0x157   :  { %505 = vsyncpa [#allocation5], 1 }
 0x158   :  { %507 = vsyncpa [#allocation5 + $0x1], 1 }

</bundles_post_ra>
